<compile_context>
chip_gen: v7x
topology: tpu7x:2x2x1
jax: 0.10.0
libtpu: 0.0.40
codegen_flags: <defaults>
</compile_context>

<pallas_src>
import math

import jax
import jax.numpy as jnp
from jax.experimental import pallas as pl
from jax.experimental.pallas import tpu as pltpu


_LANE_WIDTHS = (1024, 512, 256, 128)
_TARGET_TILE_BYTES = 1 << 20  # ~1 MiB of contiguous DMA per operand per step


def _make_coord_linear_kernel(f_in, f_out, tr, have_bias):
    """out[j] = sum_i x[i] * w[j*f_in + i] (+ b[j]), streamed 8 rows at a time."""
    chunk = 8
    full_chunks = tr // chunk
    tail = tr % chunk

    def kernel(*refs):
        if have_bias:
            w_ref, b_ref = refs[0], refs[1]
            rest = refs[2:]
        else:
            w_ref, b_ref = refs[0], None
            rest = refs[1:]
        in_refs = rest[:f_in]
        out_refs = rest[f_in:]

        def do_rows(r0, nrows):
            # f_in input chunks + 1 accumulator live at a time: ~5 vregs per
            # 128 lanes of the chunk -> no register spills.
            xs = [r[pl.ds(r0, nrows), :].astype(jnp.float32) for r in in_refs]
            for j in range(f_out):
                acc = xs[0] * w_ref[j * f_in + 0]
                for i in range(1, f_in):
                    acc = acc + xs[i] * w_ref[j * f_in + i]
                if have_bias:
                    acc = acc + b_ref[j]
                out_refs[j][pl.ds(r0, nrows), :] = acc.astype(out_refs[j].dtype)

        if full_chunks == 1 and tail == 0:
            do_rows(0, chunk)
        elif full_chunks > 0:
            @pl.loop(0, full_chunks)
            def _(c):
                do_rows(pl.multiple_of(c * chunk, chunk), chunk)
        if tail:
            do_rows(full_chunks * chunk, tail)

    return kernel


def coordinate_linear_pallas(inps, weight, bias):
    """inps: list of `in_features` arrays (same shape); returns a list of
    `out_features` arrays of that shape."""
    f_out, f_in = weight.shape
    assert len(inps) == f_in
    elem_shape = inps[0].shape
    dtype = inps[0].dtype
    n = math.prod(elem_shape)
    itemsize = jnp.dtype(dtype).itemsize

    # Contiguous (rows, LW) layout: prefer an LW that divides n exactly so the
    # reshape is a free view and no padding pass is needed.
    lw = next((c for c in _LANE_WIDTHS if n % c == 0), None)
    pad = 0
    if lw is None:
        # TODO(synk): ragged n (not a multiple of 128) pays one flat pad copy
        # per input and a slice per output; could be a masked tail block.
        lw = 128
        rows = -(-n // lw)
        pad = rows * lw - n
    else:
        rows = n // lw

    # Row tile sized for ~1 MiB of contiguous DMA per operand per grid step;
    # 2 x (f_in + f_out) double-buffered tiles stay ~20 MiB of VMEM, which is
    # safe on v7x (64 MiB physical) and v5e/v6e alike.
    tr = max(8, (_TARGET_TILE_BYTES // (lw * itemsize)) // 8 * 8)
    if rows <= tr:
        tr = rows          # full (second-to-last) dim: always a legal block
    grid = (pl.cdiv(rows, tr),)

    xs = []
    for t in inps:
        x = jnp.reshape(t, (-1,))
        if pad:
            x = jnp.pad(x, (0, pad))
        xs.append(jnp.reshape(x, (rows, lw)))

    have_bias = bias is not None
    scalars = [jnp.reshape(weight.astype(jnp.float32), (f_out * f_in,))]
    if have_bias:
        scalars.append(jnp.reshape(bias.astype(jnp.float32), (f_out,)))

    io_spec = pl.BlockSpec((tr, lw), lambda i: (i, 0))
    smem_spec = pl.BlockSpec(memory_space=pltpu.MemorySpace.SMEM)

    cost = pl.CostEstimate(
        flops=(2 * f_in + (1 if have_bias else 0)) * f_out * n,
        transcendentals=0,
        bytes_accessed=(f_in + f_out) * n * itemsize)

    outs = pl.pallas_call(
        _make_coord_linear_kernel(f_in, f_out, tr, have_bias),
        out_shape=tuple(jax.ShapeDtypeStruct((rows, lw), dtype)
                        for _ in range(f_out)),
        grid_spec=pltpu.PrefetchScalarGridSpec(
            num_scalar_prefetch=0,
            grid=grid,
            in_specs=[smem_spec] * len(scalars) + [io_spec] * f_in,
            out_specs=tuple(io_spec for _ in range(f_out)),
        ),
        compiler_params=pltpu.CompilerParams(
            dimension_semantics=("parallel",),
            vmem_limit_bytes=32 * 1024 * 1024),
        cost_estimate=cost,
    )(*scalars, *xs)

    results = []
    for o in outs:
        if pad:
            o = jnp.reshape(o, (-1,))[:n]
        results.append(jnp.reshape(o, elem_shape))
    return results


def init_params(key, in_features, out_features, bias=True):
    # kaiming_uniform_(a=sqrt(5)) on an (out, in) matrix reduces to
    # U(-1/sqrt(fan_in), 1/sqrt(fan_in)); same bound for the bias.
    kw, kb = jax.random.split(key)
    bound = 1.0 / math.sqrt(in_features)
    weight = jax.random.uniform(
        kw, (out_features, in_features), jnp.float32, -bound, bound)
    b = (jax.random.uniform(kb, (out_features,), jnp.float32, -bound, bound)
         if bias else None)
    return weight, b


def _reference(inps, weight, bias):
    f_out, f_in = weight.shape
    outs = []
    for j in range(f_out):
        o = sum(inps[i] * weight[j, i] for i in range(f_in))
        if bias is not None:
            o = o + bias[j]
        outs.append(o)
    return outs


if __name__ == "__main__":
    key = jax.random.PRNGKey(0)
    in_features, out_features = 4, 6

    k_params, k_inps = jax.random.split(key)
    weight, bias = init_params(k_params, in_features, out_features, bias=True)

    # Small NCHW-style check (single grid step, full-array block).
    shape_small = (2, 4, 16, 16)
    inp_keys = jax.random.split(k_inps, in_features)
    inps = [jax.random.normal(k, shape_small, jnp.float32) for k in inp_keys]
    outs = coordinate_linear_pallas(inps, weight, bias)
    outs = [jax.block_until_ready(o) for o in outs]
    refs = _reference(inps, weight, bias)
    for o, r in zip(outs, refs):
        assert o.shape == shape_small
        assert jnp.allclose(o, r, atol=1e-5, rtol=1e-5), "mismatch (small)"

    # Larger check exercising the multi-step pipelined grid, the inner 8-row
    # chunk loop, and the no-bias kernel variant.
    shape_big = (8, 4, 64, 256)   # 524288 elems -> rows=512, TR=256, grid=(2,)
    inp_keys = jax.random.split(jax.random.PRNGKey(1), in_features)
    inps_b = [jax.random.normal(k, shape_big, jnp.float32) for k in inp_keys]
    outs_b = coordinate_linear_pallas(inps_b, weight, None)
    outs_b = [jax.block_until_ready(o) for o in outs_b]
    refs_b = _reference(inps_b, weight, None)
    for o, r in zip(outs_b, refs_b):
        assert o.shape == shape_big
        assert jnp.allclose(o, r, atol=1e-5, rtol=1e-5), "mismatch (big)"

    print("KERNEL_OK")
</pallas_src>

<mosaic_0001>
module attributes {stable_mosaic.version = 11 : i64} {
  func.func @kernel(%arg0: i32, %arg1: memref<24xf32, #tpu.memory_space<smem>>, %arg2: memref<6xf32, #tpu.memory_space<smem>>, %arg3: memref<2x1024xf32, #tpu.memory_space<vmem>>, %arg4: memref<2x1024xf32, #tpu.memory_space<vmem>>, %arg5: memref<2x1024xf32, #tpu.memory_space<vmem>>, %arg6: memref<2x1024xf32, #tpu.memory_space<vmem>>, %arg7: memref<2x1024xf32, #tpu.memory_space<vmem>>, %arg8: memref<2x1024xf32, #tpu.memory_space<vmem>>, %arg9: memref<2x1024xf32, #tpu.memory_space<vmem>>, %arg10: memref<2x1024xf32, #tpu.memory_space<vmem>>, %arg11: memref<2x1024xf32, #tpu.memory_space<vmem>>, %arg12: memref<2x1024xf32, #tpu.memory_space<vmem>>) attributes {dimension_semantics = [#tpu.dimension_semantics<parallel>], iteration_bounds = array<i64: 1>, scalar_prefetch = 0 : i64, scratch_operands = 0 : i64, tpu.core_type = #tpu.core_type<tc>, window_params = [{transform_indices = @transform_0, window_bounds = array<i64: 24>}, {transform_indices = @transform_1, window_bounds = array<i64: 6>}, {transform_indices = @transform_2, window_bounds = array<i64: 2, 1024>}, {transform_indices = @transform_3, window_bounds = array<i64: 2, 1024>}, {transform_indices = @transform_4, window_bounds = array<i64: 2, 1024>}, {transform_indices = @transform_5, window_bounds = array<i64: 2, 1024>}, {transform_indices = @transform_6, window_bounds = array<i64: 2, 1024>}, {transform_indices = @transform_7, window_bounds = array<i64: 2, 1024>}, {transform_indices = @transform_8, window_bounds = array<i64: 2, 1024>}, {transform_indices = @transform_9, window_bounds = array<i64: 2, 1024>}, {transform_indices = @transform_10, window_bounds = array<i64: 2, 1024>}, {transform_indices = @transform_11, window_bounds = array<i64: 2, 1024>}]} {
    %c0 = arith.constant 0 : index
    %c0_0 = arith.constant 0 : index
    %0 = vector.load %arg3[%c0, %c0_0] : memref<2x1024xf32, #tpu.memory_space<vmem>>, vector<2x1024xf32>
    %c0_1 = arith.constant 0 : index
    %c0_2 = arith.constant 0 : index
    %1 = vector.load %arg4[%c0_1, %c0_2] : memref<2x1024xf32, #tpu.memory_space<vmem>>, vector<2x1024xf32>
    %c0_3 = arith.constant 0 : index
    %c0_4 = arith.constant 0 : index
    %2 = vector.load %arg5[%c0_3, %c0_4] : memref<2x1024xf32, #tpu.memory_space<vmem>>, vector<2x1024xf32>
    %c0_5 = arith.constant 0 : index
    %c0_6 = arith.constant 0 : index
    %3 = vector.load %arg6[%c0_5, %c0_6] : memref<2x1024xf32, #tpu.memory_space<vmem>>, vector<2x1024xf32>
    %c0_7 = arith.constant 0 : index
    %4 = memref.load %arg1[%c0_7] : memref<24xf32, #tpu.memory_space<smem>>
    %5 = vector.broadcast %4 : f32 to vector<2x1024xf32>
    %6 = arith.mulf %0, %5 : vector<2x1024xf32>
    %c1 = arith.constant 1 : index
    %7 = memref.load %arg1[%c1] : memref<24xf32, #tpu.memory_space<smem>>
    %8 = vector.broadcast %7 : f32 to vector<2x1024xf32>
    %9 = arith.mulf %1, %8 : vector<2x1024xf32>
    %10 = arith.addf %6, %9 : vector<2x1024xf32>
    %c2 = arith.constant 2 : index
    %11 = memref.load %arg1[%c2] : memref<24xf32, #tpu.memory_space<smem>>
    %12 = vector.broadcast %11 : f32 to vector<2x1024xf32>
    %13 = arith.mulf %2, %12 : vector<2x1024xf32>
    %14 = arith.addf %10, %13 : vector<2x1024xf32>
    %c3 = arith.constant 3 : index
    %15 = memref.load %arg1[%c3] : memref<24xf32, #tpu.memory_space<smem>>
    %16 = vector.broadcast %15 : f32 to vector<2x1024xf32>
    %17 = arith.mulf %3, %16 : vector<2x1024xf32>
    %18 = arith.addf %14, %17 : vector<2x1024xf32>
    %c0_8 = arith.constant 0 : index
    %19 = memref.load %arg2[%c0_8] : memref<6xf32, #tpu.memory_space<smem>>
    %20 = vector.broadcast %19 : f32 to vector<2x1024xf32>
    %21 = arith.addf %18, %20 : vector<2x1024xf32>
    %c0_9 = arith.constant 0 : index
    %c0_10 = arith.constant 0 : index
    %22 = vector.load %arg7[%c0_9, %c0_10] : memref<2x1024xf32, #tpu.memory_space<vmem>>, vector<2x1024xf32>
    tpu.vector_store %arg7[%c0_9, %c0_10], %21 {strides = array<i32>} : memref<2x1024xf32, #tpu.memory_space<vmem>>, vector<2x1024xf32>,
    %c4 = arith.constant 4 : index
    %23 = memref.load %arg1[%c4] : memref<24xf32, #tpu.memory_space<smem>>
    %24 = vector.broadcast %23 : f32 to vector<2x1024xf32>
    %25 = arith.mulf %0, %24 : vector<2x1024xf32>
    %c5 = arith.constant 5 : index
    %26 = memref.load %arg1[%c5] : memref<24xf32, #tpu.memory_space<smem>>
    %27 = vector.broadcast %26 : f32 to vector<2x1024xf32>
    %28 = arith.mulf %1, %27 : vector<2x1024xf32>
    %29 = arith.addf %25, %28 : vector<2x1024xf32>
    %c6 = arith.constant 6 : index
    %30 = memref.load %arg1[%c6] : memref<24xf32, #tpu.memory_space<smem>>
    %31 = vector.broadcast %30 : f32 to vector<2x1024xf32>
    %32 = arith.mulf %2, %31 : vector<2x1024xf32>
    %33 = arith.addf %29, %32 : vector<2x1024xf32>
    %c7 = arith.constant 7 : index
    %34 = memref.load %arg1[%c7] : memref<24xf32, #tpu.memory_space<smem>>
    %35 = vector.broadcast %34 : f32 to vector<2x1024xf32>
    %36 = arith.mulf %3, %35 : vector<2x1024xf32>
    %37 = arith.addf %33, %36 : vector<2x1024xf32>
    %c1_11 = arith.constant 1 : index
    %38 = memref.load %arg2[%c1_11] : memref<6xf32, #tpu.memory_space<smem>>
    %39 = vector.broadcast %38 : f32 to vector<2x1024xf32>
    %40 = arith.addf %37, %39 : vector<2x1024xf32>
    %c0_12 = arith.constant 0 : index
    %c0_13 = arith.constant 0 : index
    %41 = vector.load %arg8[%c0_12, %c0_13] : memref<2x1024xf32, #tpu.memory_space<vmem>>, vector<2x1024xf32>
    tpu.vector_store %arg8[%c0_12, %c0_13], %40 {strides = array<i32>} : memref<2x1024xf32, #tpu.memory_space<vmem>>, vector<2x1024xf32>,
    %c8 = arith.constant 8 : index
    %42 = memref.load %arg1[%c8] : memref<24xf32, #tpu.memory_space<smem>>
    %43 = vector.broadcast %42 : f32 to vector<2x1024xf32>
    %44 = arith.mulf %0, %43 : vector<2x1024xf32>
    %c9 = arith.constant 9 : index
    %45 = memref.load %arg1[%c9] : memref<24xf32, #tpu.memory_space<smem>>
    %46 = vector.broadcast %45 : f32 to vector<2x1024xf32>
    %47 = arith.mulf %1, %46 : vector<2x1024xf32>
    %48 = arith.addf %44, %47 : vector<2x1024xf32>
    %c10 = arith.constant 10 : index
    %49 = memref.load %arg1[%c10] : memref<24xf32, #tpu.memory_space<smem>>
    %50 = vector.broadcast %49 : f32 to vector<2x1024xf32>
    %51 = arith.mulf %2, %50 : vector<2x1024xf32>
    %52 = arith.addf %48, %51 : vector<2x1024xf32>
    %c11 = arith.constant 11 : index
    %53 = memref.load %arg1[%c11] : memref<24xf32, #tpu.memory_space<smem>>
    %54 = vector.broadcast %53 : f32 to vector<2x1024xf32>
    %55 = arith.mulf %3, %54 : vector<2x1024xf32>
    %56 = arith.addf %52, %55 : vector<2x1024xf32>
    %c2_14 = arith.constant 2 : index
    %57 = memref.load %arg2[%c2_14] : memref<6xf32, #tpu.memory_space<smem>>
    %58 = vector.broadcast %57 : f32 to vector<2x1024xf32>
    %59 = arith.addf %56, %58 : vector<2x1024xf32>
    %c0_15 = arith.constant 0 : index
    %c0_16 = arith.constant 0 : index
    %60 = vector.load %arg9[%c0_15, %c0_16] : memref<2x1024xf32, #tpu.memory_space<vmem>>, vector<2x1024xf32>
    tpu.vector_store %arg9[%c0_15, %c0_16], %59 {strides = array<i32>} : memref<2x1024xf32, #tpu.memory_space<vmem>>, vector<2x1024xf32>,
    %c12 = arith.constant 12 : index
    %61 = memref.load %arg1[%c12] : memref<24xf32, #tpu.memory_space<smem>>
    %62 = vector.broadcast %61 : f32 to vector<2x1024xf32>
    %63 = arith.mulf %0, %62 : vector<2x1024xf32>
    %c13 = arith.constant 13 : index
    %64 = memref.load %arg1[%c13] : memref<24xf32, #tpu.memory_space<smem>>
    %65 = vector.broadcast %64 : f32 to vector<2x1024xf32>
    %66 = arith.mulf %1, %65 : vector<2x1024xf32>
    %67 = arith.addf %63, %66 : vector<2x1024xf32>
    %c14 = arith.constant 14 : index
    %68 = memref.load %arg1[%c14] : memref<24xf32, #tpu.memory_space<smem>>
    %69 = vector.broadcast %68 : f32 to vector<2x1024xf32>
    %70 = arith.mulf %2, %69 : vector<2x1024xf32>
    %71 = arith.addf %67, %70 : vector<2x1024xf32>
    %c15 = arith.constant 15 : index
    %72 = memref.load %arg1[%c15] : memref<24xf32, #tpu.memory_space<smem>>
    %73 = vector.broadcast %72 : f32 to vector<2x1024xf32>
    %74 = arith.mulf %3, %73 : vector<2x1024xf32>
    %75 = arith.addf %71, %74 : vector<2x1024xf32>
    %c3_17 = arith.constant 3 : index
    %76 = memref.load %arg2[%c3_17] : memref<6xf32, #tpu.memory_space<smem>>
    %77 = vector.broadcast %76 : f32 to vector<2x1024xf32>
    %78 = arith.addf %75, %77 : vector<2x1024xf32>
    %c0_18 = arith.constant 0 : index
    %c0_19 = arith.constant 0 : index
    %79 = vector.load %arg10[%c0_18, %c0_19] : memref<2x1024xf32, #tpu.memory_space<vmem>>, vector<2x1024xf32>
    tpu.vector_store %arg10[%c0_18, %c0_19], %78 {strides = array<i32>} : memref<2x1024xf32, #tpu.memory_space<vmem>>, vector<2x1024xf32>,
    %c16 = arith.constant 16 : index
    %80 = memref.load %arg1[%c16] : memref<24xf32, #tpu.memory_space<smem>>
    %81 = vector.broadcast %80 : f32 to vector<2x1024xf32>
    %82 = arith.mulf %0, %81 : vector<2x1024xf32>
    %c17 = arith.constant 17 : index
    %83 = memref.load %arg1[%c17] : memref<24xf32, #tpu.memory_space<smem>>
    %84 = vector.broadcast %83 : f32 to vector<2x1024xf32>
    %85 = arith.mulf %1, %84 : vector<2x1024xf32>
    %86 = arith.addf %82, %85 : vector<2x1024xf32>
    %c18 = arith.constant 18 : index
    %87 = memref.load %arg1[%c18] : memref<24xf32, #tpu.memory_space<smem>>
    %88 = vector.broadcast %87 : f32 to vector<2x1024xf32>
    %89 = arith.mulf %2, %88 : vector<2x1024xf32>
    %90 = arith.addf %86, %89 : vector<2x1024xf32>
    %c19 = arith.constant 19 : index
    %91 = memref.load %arg1[%c19] : memref<24xf32, #tpu.memory_space<smem>>
    %92 = vector.broadcast %91 : f32 to vector<2x1024xf32>
    %93 = arith.mulf %3, %92 : vector<2x1024xf32>
    %94 = arith.addf %90, %93 : vector<2x1024xf32>
    %c4_20 = arith.constant 4 : index
    %95 = memref.load %arg2[%c4_20] : memref<6xf32, #tpu.memory_space<smem>>
    %96 = vector.broadcast %95 : f32 to vector<2x1024xf32>
    %97 = arith.addf %94, %96 : vector<2x1024xf32>
    %c0_21 = arith.constant 0 : index
    %c0_22 = arith.constant 0 : index
    %98 = vector.load %arg11[%c0_21, %c0_22] : memref<2x1024xf32, #tpu.memory_space<vmem>>, vector<2x1024xf32>
    tpu.vector_store %arg11[%c0_21, %c0_22], %97 {strides = array<i32>} : memref<2x1024xf32, #tpu.memory_space<vmem>>, vector<2x1024xf32>,
    %c20 = arith.constant 20 : index
    %99 = memref.load %arg1[%c20] : memref<24xf32, #tpu.memory_space<smem>>
    %100 = vector.broadcast %99 : f32 to vector<2x1024xf32>
    %101 = arith.mulf %0, %100 : vector<2x1024xf32>
    %c21 = arith.constant 21 : index
    %102 = memref.load %arg1[%c21] : memref<24xf32, #tpu.memory_space<smem>>
    %103 = vector.broadcast %102 : f32 to vector<2x1024xf32>
    %104 = arith.mulf %1, %103 : vector<2x1024xf32>
    %105 = arith.addf %101, %104 : vector<2x1024xf32>
    %c22 = arith.constant 22 : index
    %106 = memref.load %arg1[%c22] : memref<24xf32, #tpu.memory_space<smem>>
    %107 = vector.broadcast %106 : f32 to vector<2x1024xf32>
    %108 = arith.mulf %2, %107 : vector<2x1024xf32>
    %109 = arith.addf %105, %108 : vector<2x1024xf32>
    %c23 = arith.constant 23 : index
    %110 = memref.load %arg1[%c23] : memref<24xf32, #tpu.memory_space<smem>>
    %111 = vector.broadcast %110 : f32 to vector<2x1024xf32>
    %112 = arith.mulf %3, %111 : vector<2x1024xf32>
    %113 = arith.addf %109, %112 : vector<2x1024xf32>
    %c5_23 = arith.constant 5 : index
    %114 = memref.load %arg2[%c5_23] : memref<6xf32, #tpu.memory_space<smem>>
    %115 = vector.broadcast %114 : f32 to vector<2x1024xf32>
    %116 = arith.addf %113, %115 : vector<2x1024xf32>
    %c0_24 = arith.constant 0 : index
    %c0_25 = arith.constant 0 : index
    %117 = vector.load %arg12[%c0_24, %c0_25] : memref<2x1024xf32, #tpu.memory_space<vmem>>, vector<2x1024xf32>
    tpu.vector_store %arg12[%c0_24, %c0_25], %116 {strides = array<i32>} : memref<2x1024xf32, #tpu.memory_space<vmem>>, vector<2x1024xf32>,
    return
  }
  func.func @transform_0(%arg0: i32) -> i32 {
    %c0_i32 = arith.constant 0 : i32
    %c0_i32_0 = arith.constant 0 : i32
    return %c0_i32 : i32
  }
  func.func @transform_1(%arg0: i32) -> i32 {
    %c0_i32 = arith.constant 0 : i32
    %c0_i32_0 = arith.constant 0 : i32
    return %c0_i32 : i32
  }
  func.func @transform_2(%arg0: i32) -> (i32, i32) {
    %c0_i32 = arith.constant 0 : i32
    %c0_i32_0 = arith.constant 0 : i32
    return %arg0, %c0_i32 : i32, i32
  }
  func.func @transform_3(%arg0: i32) -> (i32, i32) {
    %c0_i32 = arith.constant 0 : i32
    %c0_i32_0 = arith.constant 0 : i32
    return %arg0, %c0_i32 : i32, i32
  }
  func.func @transform_4(%arg0: i32) -> (i32, i32) {
    %c0_i32 = arith.constant 0 : i32
    %c0_i32_0 = arith.constant 0 : i32
    return %arg0, %c0_i32 : i32, i32
  }
  func.func @transform_5(%arg0: i32) -> (i32, i32) {
    %c0_i32 = arith.constant 0 : i32
    %c0_i32_0 = arith.constant 0 : i32
    return %arg0, %c0_i32 : i32, i32
  }
  func.func @transform_6(%arg0: i32) -> (i32, i32) {
    %c0_i32 = arith.constant 0 : i32
    %c0_i32_0 = arith.constant 0 : i32
    return %arg0, %c0_i32 : i32, i32
  }
  func.func @transform_7(%arg0: i32) -> (i32, i32) {
    %c0_i32 = arith.constant 0 : i32
    %c0_i32_0 = arith.constant 0 : i32
    return %arg0, %c0_i32 : i32, i32
  }
  func.func @transform_8(%arg0: i32) -> (i32, i32) {
    %c0_i32 = arith.constant 0 : i32
    %c0_i32_0 = arith.constant 0 : i32
    return %arg0, %c0_i32 : i32, i32
  }
  func.func @transform_9(%arg0: i32) -> (i32, i32) {
    %c0_i32 = arith.constant 0 : i32
    %c0_i32_0 = arith.constant 0 : i32
    return %arg0, %c0_i32 : i32, i32
  }
  func.func @transform_10(%arg0: i32) -> (i32, i32) {
    %c0_i32 = arith.constant 0 : i32
    %c0_i32_0 = arith.constant 0 : i32
    return %arg0, %c0_i32 : i32, i32
  }
  func.func @transform_11(%arg0: i32) -> (i32, i32) {
    %c0_i32 = arith.constant 0 : i32
    %c0_i32_0 = arith.constant 0 : i32
    return %arg0, %c0_i32 : i32, i32
  }
}

</mosaic_0001>

<bundles_post_ra>
// kernel: tpu_custom_call.1
= control target key start
LH: loop header
LB: loop body
LE: loop exit
PB: predicated region body
PF: predicated region fallthrough
CT: control target
= control target key end

     0   :  { %17 = vsyncpa [#allocation5], 0  ;;  %s1022_s0 = inlined_call_operand.hbm [shape: f32[24], index: 0, kind: input, shape index: {}]   ;;  %s1023_s1 = inlined_call_operand.vmem [shape: f32[6], index: 1, kind: input, shape index: {}]   ;;  %s1024_s2 = inlined_call_operand.hbm [shape: f32[2,1024], index: 2, kind: input, shape index: {}]   ;;  %s1025_s3 = inlined_call_operand.hbm [shape: f32[2,1024], index: 3, kind: input, shape index: {}]   ;;  %s1026_s4 = inlined_call_operand.hbm [shape: f32[2,1024], index: 4, kind: input, shape index: {}]   ;;  %s1027_s5 = inlined_call_operand.vmem [shape: f32[2,1024], index: 5, kind: input, shape index: {}]   ;;  %s1028_s6 = inlined_call_operand.hbm [shape: f32[2,1024], index: 6, kind: output, shape index: {0}]   ;;  %s1029_s7 = inlined_call_operand.hbm [shape: f32[2,1024], index: 7, kind: output, shape index: {1}]   ;;  %s1030_s8 = inlined_call_operand.hbm [shape: f32[2,1024], index: 8, kind: output, shape index: {2}]   ;;  %s1031_s9 = inlined_call_operand.hbm [shape: f32[2,1024], index: 9, kind: output, shape index: {3}]   ;;  %s1032_s10 = inlined_call_operand.hbm [shape: f32[2,1024], index: 10, kind: output, shape index: {4}]   ;;  %s1033_s11 = inlined_call_operand.hbm [shape: f32[2,1024], index: 11, kind: output, shape index: {5}]  }
   0x1   :  { %18 = vsyncpa [#allocation6], 0 }
   0x2   :  { %19 = vsyncpa [#allocation3], 0 }
   0x3   :  { %20 = vsyncpa [#allocation10], 0 }
   0x4   :  { %21 = vsyncpa [#allocation4], 0 }
   0x5   :  { %22 = vsyncpa [#allocation14], 0 }
   0x6   :  { %23 = vsyncpa [#allocation17], 0 }
   0x7   :  { %24 = vsyncpa [#allocation20], 0  ;;  %s628_s17 = smov [#allocation9]   ;;  %s39_s21 = sshll.u32 %s1023_s1, 4  ;;  %s702_s21 = int_to_ptr.vmem [resolvable:$true] %s39_s21 }
   0x8   :  { %s59_s18 = sshll.u32 %s628_s17, 4  ;;  %s392_s24 = scalar_lea.hbm %s1025_s3, 256  ;;  %s60_s18 = int_to_ptr.vmem [resolvable:$true] %s59_s18 }
   0x9   :  { %p393_p0 = scmp.ne.s32.totalorder %s1025_s3, %s392_s24  ;;  %p396_p1 = scmp.lt.u32.totalorder %s392_s24, %s1025_s3 }
   0xb   :  { %p398_p2 = pnand %p396_p1, %p393_p0 }
   0xd   :  { %401 = shalt.err (!%p398_p2)
}
   0xe   :  { %s402_s29 = scalar_lea.vmem %s60_s18, 256  ;;  %p407_p4 = scmp.lt.s32.totalorder %s60_s18, %s60_s18 }
   0xf   :  { %p403_p3 = scmp.ne.s32.totalorder %s60_s18, %s402_s29  ;;  %p408_p5 = scmp.lt.s32.totalorder %s402_s29, %s402_s29 }
  0x11   :  { %p409_p6 = por %p408_p5, %p407_p4 }
  0x13   :  { %p410_p7 = pnand %p409_p6, %p403_p3 }
  0x15   :  { %413 = shalt.err (!%p410_p7)
}
  0x16   :  { %62 = dma.hbm_to_vmem [thread:$0]  %s1025_s3, 256, %s60_s18, [#allocation10]  }
  0x17   :  { %s414_s14 = scalar_lea.hbm %s1022_s0, 16 }
  0x18   :  { %p415_p8 = scmp.ne.s32.totalorder %s1022_s0, %s414_s14  ;;  %p418_p9 = scmp.lt.u32.totalorder %s414_s14, %s1022_s0 }
  0x1a   :  { %p420_p10 = pnand %p418_p9, %p415_p8 }
  0x1c   :  { %423 = shalt.err (!%p420_p10)
}
  0x1d   :  { %s629_s20 = smov [#allocation2]   ;;  %s424_s3 = scalar_lea.vmem %s702_s21, 16 }
  0x1e   :  { %32 = dma.hbm_to_smem %s1022_s0, 16, %s629_s20, [#allocation5]  }
  0x1f   :  { %p425_p11 = scmp.ne.s32.totalorder %s702_s21, %s424_s3  ;;  %p429_p12 = scmp.lt.s32.totalorder %s702_s21, %s702_s21 }
  0x20   :  { %p430_p13 = scmp.lt.s32.totalorder %s424_s3, %s424_s3 }
  0x22   :  { %p431_p0 = por %p430_p13, %p429_p12 }
  0x24   :  { %p432_p1 = pnand %p431_p0, %p425_p11 }
  0x26   :  { %435 = shalt.err (!%p432_p1)
}
  0x27   :  { %s630_s18 = smov [#allocation7]   ;;  %s631_s24 = smov [#allocation8]  }
  0x28   :  { %42 = dma.vmem_to_smem %s702_s21, 16, %s630_s18, [#allocation6]  }
  0x29   :  { %s49_s25 = sshll.u32 %s631_s24, 4  ;;  %s632_s26 = smov [#allocation11]   ;;  %s50_s25 = int_to_ptr.vmem [resolvable:$true] %s49_s25 }
  0x2a   :  { %s69_s27 = sshll.u32 %s632_s26, 4  ;;  %s436_s0 = scalar_lea.hbm %s1024_s2, 256  ;;  %s70_s27 = int_to_ptr.vmem [resolvable:$true] %s69_s27 }
  0x2b   :  { %p437_p2 = scmp.ne.s32.totalorder %s1024_s2, %s436_s0  ;;  %p440_p3 = scmp.lt.u32.totalorder %s436_s0, %s1024_s2 }
  0x2d   :  { %p442_p4 = pnand %p440_p3, %p437_p2 }
  0x2f   :  { %445 = shalt.err (!%p442_p4)
}
  0x30   :  { %s446_s21 = scalar_lea.vmem %s50_s25, 256  ;;  %p451_p6 = scmp.lt.s32.totalorder %s50_s25, %s50_s25 }
  0x31   :  { %p447_p5 = scmp.ne.s32.totalorder %s50_s25, %s446_s21  ;;  %p452_p7 = scmp.lt.s32.totalorder %s446_s21, %s446_s21 }
  0x33   :  { %p453_p8 = por %p452_p7, %p451_p6 }
  0x35   :  { %p454_p9 = pnand %p453_p8, %p447_p5 }
  0x37   :  { %457 = shalt.err (!%p454_p9)
}
  0x38   :  { %52 = dma.hbm_to_vmem [thread:$0]  %s1024_s2, 256, %s50_s25, [#allocation3]  }
  0x39   :  { %s458_s19 = scalar_lea.hbm %s1026_s4, 256 }
  0x3a   :  { %p459_p10 = scmp.ne.s32.totalorder %s1026_s4, %s458_s19  ;;  %p462_p11 = scmp.lt.u32.totalorder %s458_s19, %s1026_s4 }
  0x3c   :  { %p464_p12 = pnand %p462_p11, %p459_p10 }
  0x3e   :  { %467 = shalt.err (!%p464_p12)
}
  0x3f   :  { %s468_s18 = scalar_lea.vmem %s70_s27, 256  ;;  %p473_p0 = scmp.lt.s32.totalorder %s70_s27, %s70_s27 }
  0x40   :  { %p469_p13 = scmp.ne.s32.totalorder %s70_s27, %s468_s18  ;;  %p474_p1 = scmp.lt.s32.totalorder %s468_s18, %s468_s18 }
  0x42   :  { %p475_p2 = por %p474_p1, %p473_p0 }
  0x44   :  { %p476_p3 = pnand %p475_p2, %p469_p13 }
  0x46   :  { %479 = shalt.err (!%p476_p3)
}
  0x47   :  { %72 = dma.hbm_to_vmem [thread:$0]  %s1026_s4, 256, %s70_s27, [#allocation10]  }
  0x48   :  { %612 = dma.done.wait [#allocation5], 16  }
  0x49   :  { %613 = vsyncadd [#allocation5], 4294967280 }
  0x4a   :  { %614 = dma.done.wait [#allocation6], 16  }
  0x4b   :  { %615 = vsyncadd [#allocation6], 4294967280 }
  0x4c   :  { %616 = dma.done.wait [#allocation3], 256  }
  0x4d   :  { %617 = vsyncadd [#allocation3], 4294967040 }
  0x4e   :  { %618 = dma.done.wait [#allocation10], 512  }
  0x4f   :  { %619 = vsyncadd [#allocation10], 4294966784 }
  0x50   :  { %90 = sfence }
  0x51   :  { %s356_s25 = sld [smem:[#allocation2 + $0x4]]  ;;  %s757_s26 = sld [smem:[#allocation2 + $0x5]]  ;;  %v769_v0 = vld [vmem:[#allocation8] sm:$0xff]  ;;  %v771_v1 = vld [vmem:[#allocation8 + $0x8] sm:$0xff]  ;;  %v777_v2 = vld [vmem:[#allocation9] sm:$0xff] }
  0x52   :  { %s759_s28 = sld [smem:[#allocation2 + $0x6]]  ;;  %s761_s29 = sld [smem:[#allocation2 + $0x7]]  ;;  %v779_v3 = vld [vmem:[#allocation11] sm:$0xff]  ;;  %v784_v4 = vld [vmem:[%s1027_s5] sm:$0xff]  ;;  %v788_v6 = vld [vmem:[#allocation9 + $0x8] sm:$0xff] }
  0x53   :  { %s763_s0 = sld [smem:[#allocation7 + $0x1]]  ;;  %s765_s1 = sld [smem:[#allocation2 + $0xc]]  ;;  %v790_v7 = vld [vmem:[#allocation11 + $0x8] sm:$0xff]  ;;  %v795_v8 = vld [vmem:[%s1027_s5 + $0x8] sm:$0xff] }
  0x54   :  { %s767_s4 = sld [smem:[#allocation2 + $0xd]]  ;;  %s773_s27 = sld [smem:[#allocation2 + $0xe]] }
  0x55   :  { %s775_s30 = sld [smem:[#allocation2 + $0xf]]  ;;  %s786_s21 = sld [smem:[#allocation7 + $0x3]] }
  0x56   :  { %s797_s16 = sld [smem:[#allocation2]]  ;;  %s803_s17 = sld [smem:[#allocation2 + $0x1]] }
  0x57   :  { %v128_v5 = vstv %s356_s25  ;;  %v132_v10 = vstv %s757_s26  ;;  %s809_s5 = sld [smem:[#allocation2 + $0x2]]  ;;  %s811_s19 = sld [smem:[#allocation2 + $0x3]] }
  0x58   :  { %v129_v9 = vmul.f32 %v128_v5, %v769_v0  ;;  %v138_v11 = vstv %s759_s28  ;;  %v130_v12 = vmul.f32 %v128_v5, %v771_v1  ;;  %v133_v13 = vmul.f32 %v132_v10, %v777_v2  ;;  %s820_s20 = sld [smem:[#allocation7]]  ;;  %s830_s23 = sld [smem:[#allocation2 + $0x9]] }
  0x59   :  { %v139_v14 = vmul.f32 %v138_v11, %v779_v3  ;;  %v144_v15 = vstv %s761_s29  ;;  %v150_v16 = vstv %s763_s0  ;;  %v134_v18 = vmul.f32 %v132_v10, %v788_v6  ;;  %s828_s22 = sld [smem:[#allocation2 + $0x8]]  ;;  %s834_s3 = sld [smem:[#allocation2 + $0xa]] }
  0x5a   :  { %v145_v17 = vmul.f32 %v144_v15, %v784_v4  ;;  %v140_v19 = vmul.f32 %v138_v11, %v790_v7  ;;  %v146_v20 = vmul.f32 %v144_v15, %v795_v8  ;;  %v135_v21 = vadd.f32 %v133_v13, %v129_v9  ;;  %s839_s18 = sld [smem:[#allocation2 + $0xb]]  ;;  %s841_s2 = sld [smem:[#allocation7 + $0x2]] }
  0x5b   :  { %v184_v22 = vstv %s765_s1  ;;  %v188_v23 = vstv %s767_s4  ;;  %v194_v24 = vstv %s773_s27  ;;  %v136_v25 = vadd.f32 %v134_v18, %v130_v12  ;;  %s633_s24 = smov [#allocation13]   ;;  %s847_s26 = sld [smem:[#allocation2 + $0x10]] }
  0x5c   :  { %v185_v26 = vmul.f32 %v184_v22, %v769_v0  ;;  %v189_v27 = vmul.f32 %v188_v23, %v777_v2  ;;  %v195_v28 = vmul.f32 %v194_v24, %v779_v3  ;;  %v141_v29 = vadd.f32 %v139_v14, %v135_v21  ;;  %s283_s25 = sshll.u32 %s633_s24, 4  ;;  %s850_s28 = sld [smem:[#allocation2 + $0x11]]  ;;  %s852_s25 = int_to_ptr.vmem [resolvable:$true] %s283_s25 }
  0x5d   :  { %v200_v30 = vstv %s775_s30  ;;  %v206_v31 = vstv %s786_s21  ;;  %v186_v32 = vmul.f32 %v184_v22, %v771_v1  ;;  %v142_v33 = vadd.f32 %v140_v19, %v136_v25  ;;  %s858_s29 = sld [smem:[#allocation2 + $0x12]]  ;;  %s634_s0 = smov [#allocation16]  }
  0x5e   :  { %v191_v34 = vadd.f32 %v189_v27, %v185_v26  ;;  %v201_v35 = vmul.f32 %v200_v30, %v784_v4  ;;  %v190_v36 = vmul.f32 %v188_v23, %v788_v6  ;;  %v147_v37 = vadd.f32 %v145_v17, %v141_v29  ;;  %s303_s1 = sshll.u32 %s634_s0, 4  ;;  %s863_s4 = sld [smem:[#allocation2 + $0x13]]  ;;  %s891_s1 = int_to_ptr.vmem [resolvable:$true] %s303_s1 }
  0x5f   :  { %v196_v38 = vmul.f32 %v194_v24, %v790_v7  ;;  %v202_v39 = vmul.f32 %v200_v30, %v795_v8  ;;  %v100_v40 = vstv %s797_s16  ;;  %v148_v41 = vadd.f32 %v146_v20, %v142_v33  ;;  %s480_s27 = scalar_lea.vmem %s852_s25, 256  ;;  %p485_p5 = scmp.lt.s32.totalorder %s852_s25, %s852_s25 }
  0x60   :  { %v197_v42 = vadd.f32 %v195_v28, %v191_v34  ;;  %v192_v43 = vadd.f32 %v190_v36, %v186_v32  ;;  %v101_v44 = vmul.f32 %v100_v40, %v769_v0  ;;  %v151_v45 = vadd.f32 %v150_v16, %v147_v37  ;;  %p481_p4 = scmp.ne.s32.totalorder %s852_s25, %s480_s27  ;;  %p486_p6 = scmp.lt.s32.totalorder %s480_s27, %s480_s27 }
  0x61   :  { %v104_v46 = vstv %s803_s17  ;;  %v110_v47 = vstv %s809_s5  ;;  %v116_v48 = vstv %s811_s19  ;;  %v152_v49 = vadd.f32 %v150_v16, %v148_v41 }
  0x62   :  { %v203_v50 = vadd.f32 %v201_v35, %v197_v42  ;;  %v198_v51 = vadd.f32 %v196_v38, %v192_v43  ;;  %v105_v52 = vmul.f32 %v104_v46, %v777_v2  ;;  %153 = vst [vmem:[#allocation13] sm:$0xff] %v151_v45  ;;  %v111_v53 = vmul.f32 %v110_v47, %v779_v3  ;;  %p487_p7 = por %p486_p6, %p485_p5 }
  0x63   :  { %v117_v54 = vmul.f32 %v116_v48, %v784_v4  ;;  %v122_v55 = vstv %s820_s20  ;;  %v102_v56 = vmul.f32 %v100_v40, %v771_v1  ;;  %154 = vst [vmem:[#allocation13 + $0x8] sm:$0xff] %v152_v49  ;;  %v106_v60 = vmul.f32 %v104_v46, %v788_v6 }
  0x64   :  { %v207_v57 = vadd.f32 %v206_v31, %v203_v50  ;;  %v204_v58 = vadd.f32 %v202_v39, %v198_v51  ;;  %v107_v59 = vadd.f32 %v105_v52, %v101_v44  ;;  %v112_v61 = vmul.f32 %v110_v47, %v790_v7  ;;  %p488_p8 = pnand %p487_p7, %p481_p4 }
  0x65   :  { %v118_v62 = vmul.f32 %v116_v48, %v795_v8  ;;  %v156_v63 = vstv %s828_s22  ;;  %v160_v5 = vstv %s830_s23 }
  0x66   :  { %491 = shalt.err (!%p488_p8)
}
  0x67   :  { %s492_s13 = scalar_lea.hbm %s1029_s7, 256 }
  0x68   :  { %p493_p9 = scmp.ne.s32.totalorder %s1029_s7, %s492_s13  ;;  %p496_p10 = scmp.lt.u32.totalorder %s492_s13, %s1029_s7 }
  0x6a   :  { %p498_p11 = pnand %p496_p10, %p493_p9 }
  0x6c   :  { %501 = shalt.err (!%p498_p11)
}
  0x6d   :  { %286 = dma.vmem_to_hbm [thread:$0]  %s852_s25, 256, %s1029_s7, [#allocation14]   ;;  %209 = vst [vmem:[#allocation16] sm:$0xff] %v207_v57  ;;  %v208_v9 = vadd.f32 %v206_v31, %v204_v58  ;;  %v113_v10 = vadd.f32 %v111_v53, %v107_v59  ;;  %v108_v11 = vadd.f32 %v106_v60, %v102_v56  ;;  %v157_v12 = vmul.f32 %v156_v63, %v769_v0 }
  0x6e   :  { %s889_s22 = sld [smem:[#allocation7 + $0x4]]  ;;  %v161_v13 = vmul.f32 %v160_v5, %v777_v2  ;;  %v166_v14 = vstv %s834_s3  ;;  %v172_v15 = vstv %s839_s18  ;;  %v178_v16 = vstv %s841_s2  ;;  %s899_s7 = sld [smem:[#allocation2 + $0x15]] }
  0x6f   :  { %s897_s23 = sld [smem:[#allocation2 + $0x14]]  ;;  %210 = vst [vmem:[#allocation16 + $0x8] sm:$0xff] %v208_v9  ;;  %v119_v17 = vadd.f32 %v117_v54, %v113_v10  ;;  %v114_v18 = vadd.f32 %v112_v61, %v108_v11  ;;  %v167_v19 = vmul.f32 %v166_v14, %v779_v3  ;;  %v173_v20 = vmul.f32 %v172_v15, %v784_v4  ;;  %s903_s21 = sld [smem:[#allocation2 + $0x16]] }
  0x70   :  { %s635_s24 = smov [#allocation12]   ;;  %v163_v21 = vadd.f32 %v161_v13, %v157_v12  ;;  %v158_v22 = vmul.f32 %v156_v63, %v771_v1  ;;  %v162_v23 = vmul.f32 %v160_v5, %v788_v6  ;;  %v168_v24 = vmul.f32 %v166_v14, %v790_v7  ;;  %s502_s18 = scalar_lea.vmem %s891_s1, 256 }
  0x71   :  { %s905_s3 = sshll.u32 %s635_s24, 4  ;;  %p503_p12 = scmp.ne.s32.totalorder %s891_s1, %s502_s18  ;;  %s941_s3 = int_to_ptr.vmem [resolvable:$true] %s905_s3 }
  0x72   :  { %p507_p13 = scmp.lt.s32.totalorder %s891_s1, %s891_s1  ;;  %p508_p0 = scmp.lt.s32.totalorder %s502_s18, %s502_s18 }
  0x74   :  { %p509_p1 = por %p508_p0, %p507_p13 }
  0x76   :  { %p510_p2 = pnand %p509_p1, %p503_p12 }
  0x78   :  { %513 = shalt.err (!%p510_p2)
}
  0x79   :  { %s514_s27 = scalar_lea.hbm %s1031_s9, 256 }
  0x7a   :  { %p515_p3 = scmp.ne.s32.totalorder %s1031_s9, %s514_s27  ;;  %p518_p4 = scmp.lt.u32.totalorder %s514_s27, %s1031_s9 }
  0x7c   :  { %p520_p5 = pnand %p518_p4, %p515_p3 }
  0x7e   :  { %523 = shalt.err (!%p520_p5)
}
  0x7f   :  { %306 = dma.vmem_to_hbm [thread:$0]  %s891_s1, 256, %s1031_s9, [#allocation17]   ;;  %v123_v25 = vadd.f32 %v122_v55, %v119_v17  ;;  %v120_v26 = vadd.f32 %v118_v62, %v114_v18  ;;  %v174_v27 = vmul.f32 %v172_v15, %v795_v8  ;;  %v212_v28 = vstv %s847_s26 }
  0x80   :  { %s931_s17 = sld [smem:[#allocation2 + $0x17]]  ;;  %v169_v29 = vadd.f32 %v167_v19, %v163_v21  ;;  %v164_v30 = vadd.f32 %v162_v23, %v158_v22  ;;  %v213_v31 = vmul.f32 %v212_v28, %v769_v0  ;;  %v216_v32 = vstv %s850_s28  ;;  %s948_s9 = sld [smem:[#allocation7 + $0x5]] }
  0x81   :  { %125 = vst [vmem:[#allocation12] sm:$0xff] %v123_v25  ;;  %v124_v33 = vadd.f32 %v122_v55, %v120_v26  ;;  %v217_v34 = vmul.f32 %v216_v32, %v777_v2  ;;  %v222_v35 = vstv %s858_s29  ;;  %v228_v36 = vstv %s863_s4  ;;  %s636_s20 = smov [#allocation15]   ;;  %s524_s28 = scalar_lea.vmem %s941_s3, 256 }
  0x82   :  { %v175_v37 = vadd.f32 %v173_v20, %v169_v29  ;;  %v170_v38 = vadd.f32 %v168_v24, %v164_v30  ;;  %v223_v39 = vmul.f32 %v222_v35, %v779_v3  ;;  %v229_v40 = vmul.f32 %v228_v36, %v784_v4  ;;  %s293_s26 = sshll.u32 %s636_s20, 4  ;;  %p525_p6 = scmp.ne.s32.totalorder %s941_s3, %s524_s28  ;;  %s294_s26 = int_to_ptr.vmem [resolvable:$true] %s293_s26 }
  0x83   :  { %126 = vst [vmem:[#allocation12 + $0x8] sm:$0xff] %v124_v33  ;;  %v219_v41 = vadd.f32 %v217_v34, %v213_v31  ;;  %v234_v42 = vstv %s889_s22  ;;  %v214_v43 = vmul.f32 %v212_v28, %v771_v1  ;;  %v218_v44 = vmul.f32 %v216_v32, %v788_v6  ;;  %p529_p7 = scmp.lt.s32.totalorder %s941_s3, %s941_s3  ;;  %p530_p8 = scmp.lt.s32.totalorder %s524_s28, %s524_s28 }
  0x84   :  { %v179_v45 = vadd.f32 %v178_v16, %v175_v37  ;;  %v176_v46 = vadd.f32 %v174_v27, %v170_v38  ;;  %v224_v47 = vmul.f32 %v222_v35, %v790_v7  ;;  %v230_v48 = vmul.f32 %v228_v36, %v795_v8 }
  0x85   :  { %p531_p9 = por %p530_p8, %p529_p7 }
  0x87   :  { %p532_p10 = pnand %p531_p9, %p525_p6 }
  0x89   :  { %535 = shalt.err (!%p532_p10)
}
  0x8a   :  { %s536_s4 = scalar_lea.hbm %s1028_s6, 256 }
  0x8b   :  { %p537_p11 = scmp.ne.s32.totalorder %s1028_s6, %s536_s4  ;;  %p540_p12 = scmp.lt.u32.totalorder %s536_s4, %s1028_s6 }
  0x8d   :  { %p542_p13 = pnand %p540_p12, %p537_p11 }
  0x8f   :  { %545 = shalt.err (!%p542_p13)
}
  0x90   :  { %276 = dma.vmem_to_hbm [thread:$0]  %s941_s3, 256, %s1028_s6, [#allocation4]   ;;  %v225_v49 = vadd.f32 %v223_v39, %v219_v41  ;;  %v220_v50 = vadd.f32 %v218_v44, %v214_v43  ;;  %v240_v51 = vstv %s897_s23  ;;  %v244_v52 = vstv %s899_s7  ;;  %181 = vst [vmem:[#allocation15] sm:$0xff] %v179_v45 }
  0x91   :  { %v180_v53 = vadd.f32 %v178_v16, %v176_v46  ;;  %v241_v54 = vmul.f32 %v240_v51, %v769_v0  ;;  %v245_v55 = vmul.f32 %v244_v52, %v777_v2  ;;  %v250_v56 = vstv %s903_s21  ;;  %s637_s6 = smov [#allocation18]   ;;  %s546_s23 = scalar_lea.vmem %s294_s26, 256 }
  0x92   :  { %v231_v57 = vadd.f32 %v229_v40, %v225_v49  ;;  %v226_v58 = vadd.f32 %v224_v47, %v220_v50  ;;  %v251_v59 = vmul.f32 %v250_v56, %v779_v3  ;;  %v256_v60 = vstv %s931_s17  ;;  %s313_s2 = sshll.u32 %s637_s6, 4  ;;  %p547_p0 = scmp.ne.s32.totalorder %s294_s26, %s546_s23  ;;  %s314_s2 = int_to_ptr.vmem [resolvable:$true] %s313_s2 }
  0x93   :  { %182 = vst [vmem:[#allocation15 + $0x8] sm:$0xff] %v180_v53  ;;  %v247_v61 = vadd.f32 %v245_v55, %v241_v54  ;;  %v257_v62 = vmul.f32 %v256_v60, %v784_v4  ;;  %v242_v63 = vmul.f32 %v240_v51, %v771_v1  ;;  %v246_v0 = vmul.f32 %v244_v52, %v788_v6  ;;  %p551_p1 = scmp.lt.s32.totalorder %s294_s26, %s294_s26  ;;  %p552_p2 = scmp.lt.s32.totalorder %s546_s23, %s546_s23 }
  0x94   :  { %v235_v5 = vadd.f32 %v234_v42, %v231_v57  ;;  %v232_v9 = vadd.f32 %v230_v48, %v226_v58  ;;  %v252_v2 = vmul.f32 %v250_v56, %v790_v7 }
  0x95   :  { %p553_p3 = por %p552_p2, %p551_p1 }
  0x97   :  { %p554_p4 = pnand %p553_p3, %p547_p0 }
  0x99   :  { %557 = shalt.err (!%p554_p4)
}
  0x9a   :  { %s558_s3 = scalar_lea.hbm %s1030_s8, 256 }
  0x9b   :  { %p559_p5 = scmp.ne.s32.totalorder %s1030_s8, %s558_s3  ;;  %p562_p6 = scmp.lt.u32.totalorder %s558_s3, %s1030_s8 }
  0x9d   :  { %p564_p7 = pnand %p562_p6, %p559_p5 }
  0x9f   :  { %567 = shalt.err (!%p564_p7)
}
  0xa0   :  { %296 = dma.vmem_to_hbm [thread:$0]  %s294_s26, 256, %s1030_s8, [#allocation14]   ;;  %v253_v1 = vadd.f32 %v251_v59, %v247_v61  ;;  %237 = vst [vmem:[#allocation18] sm:$0xff] %v235_v5  ;;  %v236_v3 = vadd.f32 %v234_v42, %v232_v9  ;;  %v262_v4 = vstv %s948_s9  ;;  %v248_v6 = vadd.f32 %v246_v0, %v242_v63 }
  0xa1   :  { %v258_v7 = vmul.f32 %v256_v60, %v795_v8  ;;  %s638_s15 = smov [#allocation19]   ;;  %s568_s17 = scalar_lea.vmem %s314_s2, 256 }
  0xa2   :  { %v259_v10 = vadd.f32 %v257_v62, %v253_v1  ;;  %238 = vst [vmem:[#allocation18 + $0x8] sm:$0xff] %v236_v3  ;;  %v254_v11 = vadd.f32 %v252_v2, %v248_v6  ;;  %s323_s16 = sshll.u32 %s638_s15, 4  ;;  %p569_p8 = scmp.ne.s32.totalorder %s314_s2, %s568_s17  ;;  %s324_s16 = int_to_ptr.vmem [resolvable:$true] %s323_s16 }
  0xa3   :  { %p573_p9 = scmp.lt.s32.totalorder %s314_s2, %s314_s2  ;;  %p574_p10 = scmp.lt.s32.totalorder %s568_s17, %s568_s17 }
  0xa4   :  { %v263_v12 = vadd.f32 %v262_v4, %v259_v10 }
  0xa5   :  { %p575_p11 = por %p574_p10, %p573_p9 }
  0xa7   :  { %p576_p12 = pnand %p575_p11, %p569_p8 }
  0xa9   :  { %579 = shalt.err (!%p576_p12)
}
  0xaa   :  { %s580_s9 = scalar_lea.hbm %s1032_s10, 256 }
  0xab   :  { %p581_p13 = scmp.ne.s32.totalorder %s1032_s10, %s580_s9  ;;  %p584_p0 = scmp.lt.u32.totalorder %s580_s9, %s1032_s10 }
  0xad   :  { %p586_p1 = pnand %p584_p0, %p581_p13 }
  0xaf   :  { %589 = shalt.err (!%p586_p1)
}
  0xb0   :  { %316 = dma.vmem_to_hbm [thread:$0]  %s314_s2, 256, %s1032_s10, [#allocation17]   ;;  %v260_v8 = vadd.f32 %v258_v7, %v254_v11  ;;  %265 = vst [vmem:[#allocation19] sm:$0xff] %v263_v12 }
  0xb1   :  { %s590_s19 = scalar_lea.vmem %s324_s16, 256  ;;  %p595_p3 = scmp.lt.s32.totalorder %s324_s16, %s324_s16 }
  0xb2   :  { %v264_v13 = vadd.f32 %v262_v4, %v260_v8  ;;  %p591_p2 = scmp.ne.s32.totalorder %s324_s16, %s590_s19  ;;  %p596_p4 = scmp.lt.s32.totalorder %s590_s19, %s590_s19 }
  0xb4   :  { %266 = vst [vmem:[#allocation19 + $0x8] sm:$0xff] %v264_v13  ;;  %p597_p5 = por %p596_p4, %p595_p3 }
  0xb6   :  { %p598_p6 = pnand %p597_p5, %p591_p2 }
  0xb8   :  { %601 = shalt.err (!%p598_p6)
}
  0xb9   :  { %s602_s18 = scalar_lea.hbm %s1033_s11, 256 }
  0xba   :  { %p603_p7 = scmp.ne.s32.totalorder %s1033_s11, %s602_s18  ;;  %p606_p8 = scmp.lt.u32.totalorder %s602_s18, %s1033_s11 }
  0xbc   :  { %p608_p9 = pnand %p606_p8, %p603_p7 }
  0xbe   :  { %611 = shalt.err (!%p608_p9)
}
  0xbf   :  { %326 = dma.vmem_to_hbm [thread:$0]  %s324_s16, 256, %s1033_s11, [#allocation20]  }
  0xc0   :  { %620 = dma.done.wait [#allocation4], 256  }
  0xc1   :  { %621 = vsyncadd [#allocation4], 4294967040 }
  0xc2   :  { %622 = dma.done.wait [#allocation14], 512  }
  0xc3   :  { %623 = vsyncadd [#allocation14], 4294966784 }
  0xc4   :  { %624 = dma.done.wait [#allocation17], 512  }
  0xc5   :  { %625 = vsyncadd [#allocation17], 4294966784 }
  0xc6   :  { %626 = dma.done.wait [#allocation20], 256  }
  0xc7   :  { %627 = vsyncadd [#allocation20], 4294967040 }
  0xc8   :  { %345 = vsyncpa [#allocation3], 1 }
  0xc9   :  { %346 = vsyncpa [#allocation10], 1 }
  0xca   :  { %347 = vsyncpa [#allocation4], 1 }
  0xcb   :  { %348 = vsyncpa [#allocation14], 1 }
  0xcc   :  { %349 = vsyncpa [#allocation17], 1 }
  0xcd   :  { %350 = vsyncpa [#allocation20], 1 }
  0xce   :  { %351 = vsyncpa [#allocation5], 1 }
  0xcf   :  { %352 = vsyncpa [#allocation6], 1 }

</bundles_post_ra>
